<compile_context>
chip_gen: v7x
topology: tpu7x:2x2x1
jax: 0.10.0
libtpu: 0.0.40
codegen_flags: <defaults>
</compile_context>

<pallas_src>
import functools

import jax
import jax.numpy as jnp
from jax.experimental import pallas as pl
from jax.experimental.pallas import tpu as pltpu

_NEG = -1e30  # finite "-inf" stand-in, safe under exp/max in f32 and bf16


def _two_headed_lm_kernel(logits_ref, labels_ref, out_ref, m_sc, s_sc, t_sc, *,
                          ignore_idx, c_true, mask_classes):
    k = pl.program_id(1)                      # class-tile index (reduction axis)
    nk = pl.num_programs(1)

    # ---- init per-row online-LSE state at the first class tile ----
    @pl.when(k == 0)
    def _():
        m_sc[...] = jnp.full_like(m_sc, _NEG)
        s_sc[...] = jnp.zeros_like(s_sc)
        t_sc[...] = jnp.zeros_like(t_sc)

    xn = logits_ref[...]                      # (tn, tc) in native dtype
    tn, tc = xn.shape
    lane = jax.lax.broadcasted_iota(jnp.int32, (tn, tc), 1)   # local lane idx

    if mask_classes:
        # Only the last class tile is ragged; interior tiles see limit >= tc,
        # so this is a no-op compare there (no +k*tc per element).
        limit = c_true - k * tc
        xn = jnp.where(lane < limit, xn, jnp.array(_NEG, xn.dtype))

    labels = labels_ref[...]                  # (tn, 1) int32

    # True-class logit: each label lands in exactly one class tile; labels are
    # always < C, so they can never hit an out-of-bounds/padded column.
    tgt = labels - k * tc                     # per-row scalar, not per-element
    t_sc[...] = t_sc[...] + jnp.sum(
        jnp.where(lane == tgt, xn, jnp.array(0, xn.dtype)),
        axis=-1, keepdims=True).astype(jnp.float32)

    # ---- online logsumexp update (max/select on native dtype, exp in f32) ----
    tile_max = jnp.max(xn, axis=-1, keepdims=True).astype(jnp.float32)
    x = xn.astype(jnp.float32)
    m_old = m_sc[...]
    m_new = jnp.maximum(m_old, tile_max)
    s_sc[...] = (s_sc[...] * jnp.exp(m_old - m_new)
                 + jnp.sum(jnp.exp(x - m_new), axis=-1, keepdims=True))
    m_sc[...] = m_new

    # ---- finalize this row block on the last class tile ----
    @pl.when(k == nk - 1)
    def _():
        lse = m_sc[...] + jnp.log(s_sc[...])              # (tn, 1)
        per_row = lse - t_sc[...]                         # NLL per row
        valid = labels != ignore_idx                      # padded rows -> False
        # select (not multiply) so garbage/NaN rows of a ragged row block are
        # dropped cleanly.
        sum_nll = jnp.sum(jnp.where(valid, per_row, 0.0))
        sum_valid = jnp.sum(valid.astype(jnp.float32))

        lane_o = jax.lax.broadcasted_iota(jnp.int32, out_ref.shape, 2)
        out_ref[...] = (jnp.where(lane_o == 0, sum_nll, 0.0)
                        + jnp.where(lane_o == 1, sum_valid, 0.0))


def _round_up(x, m):
    return ((x + m - 1) // m) * m


def _cdiv(a, b):
    return -(-a // b)


def two_headed_loss(lm_logits, blank_logits, lm_labels, blank_labels,
                    lm_ignore_idx, *, row_tile=256, class_tile=None):
    """Pallas equivalent of Two_Headed_Loss.forward.

    lm_logits:    (N, C) float32/bfloat16 raw logits (streamed unpadded)
    blank_logits: (B,)   float32 probabilities in (0, 1)   (like nn.BCELoss input)
    lm_labels:    (N,)   int class indices in [0, C) or == lm_ignore_idx
    blank_labels: (B,)   float32 targets in {0, 1}

    Notes: loss is NaN when every label == ignore_idx (matches PyTorch CE);
    the blank head relies on the -100 log clamp to match BCELoss at p in {0,1}.
    """
    n, c = lm_logits.shape
    ignore_idx = int(lm_ignore_idx)
    itemsize = jnp.dtype(lm_logits.dtype).itemsize

    # ---- row tiling: multiple of 8 sublanes, and >= 2 blocks when possible so
    #      the "parallel" axis shards across both TensorCores on v7x. ----------
    tn = min(_round_up(row_tile, 8), _round_up(n, 8))
    if n > 8 and _cdiv(n, tn) < 2:
        tn = _round_up(_cdiv(n, 2), 8)
    nb_n = _cdiv(n, tn)

    # ---- class tiling: large tiles amortize the ~0.35 us per-step overhead;
    #      cap the double-buffered logits stream at ~20 MiB (v7x VMEM-safe). ---
    if class_tile is None:
        class_tile = 8192 if itemsize >= 4 else 16384
    class_tile = _round_up(class_tile, 128)
    budget = 20 * 1024 * 1024
    max_tc = max(128, (budget // (2 * tn * itemsize)) // 128 * 128)
    class_tile = min(class_tile, max_tc)
    if c <= class_tile:
        tc, mask_classes = c, False          # single full-width class tile
    else:
        tc, mask_classes = class_tile, (c % class_tile != 0)
    nb_c = _cdiv(c, tc)

    # Only the tiny 1-D labels array is padded (whole row blocks, ignore_idx),
    # so ragged-row garbage logits never enter the reduction.
    n_lab = nb_n * tn
    labels = jnp.pad(lm_labels.astype(jnp.int32), (0, n_lab - n),
                     constant_values=ignore_idx).reshape(n_lab, 1)

    kernel = functools.partial(_two_headed_lm_kernel, ignore_idx=ignore_idx,
                               c_true=c, mask_classes=mask_classes)

    partials = pl.pallas_call(
        kernel,
        out_shape=jax.ShapeDtypeStruct((nb_n, 1, 128), jnp.float32),
        grid_spec=pltpu.PrefetchScalarGridSpec(
            num_scalar_prefetch=0,
            grid=(nb_n, nb_c),
            in_specs=[
                pl.BlockSpec((tn, tc), lambda i, k: (i, k)),   # logits tile
                pl.BlockSpec((tn, 1), lambda i, k: (i, 0)),    # labels column
            ],
            out_specs=pl.BlockSpec((1, 1, 128), lambda i, k: (i, 0, 0)),
            scratch_shapes=[pltpu.VMEM((tn, 1), jnp.float32)] * 3,
        ),
        compiler_params=pltpu.CompilerParams(
            dimension_semantics=("parallel", "arbitrary"),
            vmem_limit_bytes=32 * 1024 * 1024),
    )(lm_logits, labels)

    sum_nll = jnp.sum(partials[:, 0, 0])
    sum_valid = jnp.sum(partials[:, 0, 1])
    lm_loss = sum_nll / sum_valid   # NaN if everything is ignored, like PyTorch

    # Blank head (tiny): BCELoss(reduction='mean') in plain JAX — no point
    # streaming a handful of probabilities through every row-block epilogue.
    p = blank_logits.astype(jnp.float32)
    y = blank_labels.astype(jnp.float32)
    log_p = jnp.maximum(jnp.log(p), -100.0)           # PyTorch BCE log clamp
    log_1mp = jnp.maximum(jnp.log(1.0 - p), -100.0)
    bce = -jnp.mean(y * log_p + (1.0 - y) * log_1mp)
    return lm_loss + bce


def _reference(lm_logits, blank_logits, lm_labels, blank_labels, ignore_idx):
    logits = lm_logits.astype(jnp.float32)
    lse = jax.nn.logsumexp(logits, axis=-1)
    true_logit = jnp.take_along_axis(
        logits, jnp.clip(lm_labels, 0, logits.shape[-1] - 1)[:, None],
        axis=-1)[:, 0]
    per_row = lse - true_logit
    valid = (lm_labels != ignore_idx).astype(jnp.float32)
    lm_loss = jnp.sum(per_row * valid) / jnp.sum(valid)

    p = blank_logits.astype(jnp.float32)
    y = blank_labels.astype(jnp.float32)
    bce = -jnp.mean(y * jnp.maximum(jnp.log(p), -100.0)
                    + (1.0 - y) * jnp.maximum(jnp.log(1.0 - p), -100.0))
    return lm_loss + bce


if __name__ == "__main__":
    IGNORE_IDX = -1

    # ---- test 1: tiny shapes, single (full-width) class tile, 2 row blocks ----
    k1, k2, k3, k4 = jax.random.split(jax.random.PRNGKey(0), 4)
    N, C, B = 16, 32, 8
    lm_logits = jax.random.normal(k1, (N, C), dtype=jnp.float32)
    lm_labels = jax.random.randint(k2, (N,), 0, C, dtype=jnp.int32)
    lm_labels = lm_labels.at[0].set(IGNORE_IDX).at[5].set(IGNORE_IDX)
    blank_logits = jax.nn.sigmoid(jax.random.normal(k3, (B,), dtype=jnp.float32))
    blank_labels = jax.random.bernoulli(k4, 0.5, (B,)).astype(jnp.float32)

    total = two_headed_loss(lm_logits, blank_logits, lm_labels, blank_labels,
                            IGNORE_IDX)
    total = jax.block_until_ready(total)
    ref = _reference(lm_logits, blank_logits, lm_labels, blank_labels, IGNORE_IDX)
    assert jnp.allclose(total, ref, rtol=1e-5, atol=1e-5), (total, ref)

    # ---- test 2: ragged rows AND ragged class tiles (online LSE over 3 tiles) --
    k5, k6, k7, k8 = jax.random.split(jax.random.PRNGKey(1), 4)
    N2, C2, B2 = 150, 300, 10
    lm_logits2 = jax.random.normal(k5, (N2, C2), dtype=jnp.float32)
    lm_labels2 = jax.random.randint(k6, (N2,), 0, C2, dtype=jnp.int32)
    lm_labels2 = lm_labels2.at[3].set(IGNORE_IDX).at[77].set(IGNORE_IDX)
    blank_logits2 = jax.nn.sigmoid(jax.random.normal(k7, (B2,), dtype=jnp.float32))
    blank_labels2 = jax.random.bernoulli(k8, 0.5, (B2,)).astype(jnp.float32)

    total2 = two_headed_loss(lm_logits2, blank_logits2, lm_labels2, blank_labels2,
                             IGNORE_IDX, row_tile=64, class_tile=128)
    total2 = jax.block_until_ready(total2)
    ref2 = _reference(lm_logits2, blank_logits2, lm_labels2, blank_labels2,
                      IGNORE_IDX)
    assert jnp.allclose(total2, ref2, rtol=1e-5, atol=1e-5), (total2, ref2)

    # ---- test 3: bf16 logits (native-dtype mask/max/gather path) --------------
    k9, k10, k11, k12 = jax.random.split(jax.random.PRNGKey(2), 4)
    N3, C3, B3 = 64, 520, 6
    lm_logits3 = jax.random.normal(k9, (N3, C3), dtype=jnp.float32).astype(jnp.bfloat16)
    lm_labels3 = jax.random.randint(k10, (N3,), 0, C3, dtype=jnp.int32)
    lm_labels3 = lm_labels3.at[7].set(IGNORE_IDX)
    blank_logits3 = jax.nn.sigmoid(jax.random.normal(k11, (B3,), dtype=jnp.float32))
    blank_labels3 = jax.random.bernoulli(k12, 0.5, (B3,)).astype(jnp.float32)

    total3 = two_headed_loss(lm_logits3, blank_logits3, lm_labels3, blank_labels3,
                             IGNORE_IDX, class_tile=256)
    total3 = jax.block_until_ready(total3)
    ref3 = _reference(lm_logits3, blank_logits3, lm_labels3, blank_labels3,
                      IGNORE_IDX)
    assert jnp.allclose(total3, ref3, rtol=1e-4, atol=1e-4), (total3, ref3)

    print("KERNEL_OK")
</pallas_src>

<mosaic_0001>
module attributes {stable_mosaic.version = 11 : i64} {
  func.func @_two_headed_lm_kernel(%arg0: i32, %arg1: i32, %arg2: memref<8x32xf32, #tpu.memory_space<vmem>>, %arg3: memref<8x1xi32, #tpu.memory_space<vmem>>, %arg4: memref<1x1x128xf32, #tpu.memory_space<vmem>>, %arg5: memref<8x1xf32, #tpu.memory_space<vmem>>, %arg6: memref<8x1xf32, #tpu.memory_space<vmem>>, %arg7: memref<8x1xf32, #tpu.memory_space<vmem>>) attributes {dimension_semantics = [#tpu.dimension_semantics<parallel>, #tpu.dimension_semantics<arbitrary>], iteration_bounds = array<i64: 2, 1>, scalar_prefetch = 0 : i64, scratch_operands = 3 : i64, tpu.core_type = #tpu.core_type<tc>, window_params = [{transform_indices = @transform_0, window_bounds = array<i64: 8, 32>}, {transform_indices = @transform_1, window_bounds = array<i64: 8, 1>}, {transform_indices = @transform_2, window_bounds = array<i64: 1, 1, 128>}]} {
    %c0_i32 = arith.constant 0 : i32
    %0 = arith.cmpi eq, %arg1, %c0_i32 : i32
    %1 = arith.extui %0 : i1 to i32
    %c0_i32_0 = arith.constant 0 : i32
    %2 = arith.cmpi ne, %1, %c0_i32_0 : i32
    scf.if %2 {
      %cst_21 = arith.constant -1.000000e+30 : f32
      %37 = vector.broadcast %cst_21 : f32 to vector<8x1xf32>
      %c0_22 = arith.constant 0 : index
      %c0_23 = arith.constant 0 : index
      %38 = vector.load %arg5[%c0_22, %c0_23] : memref<8x1xf32, #tpu.memory_space<vmem>>, vector<8x1xf32>
      tpu.vector_store %arg5[%c0_22, %c0_23], %37 {strides = array<i32>} : memref<8x1xf32, #tpu.memory_space<vmem>>, vector<8x1xf32>,
      %cst_24 = arith.constant 0.000000e+00 : f32
      %39 = vector.broadcast %cst_24 : f32 to vector<8x1xf32>
      %c0_25 = arith.constant 0 : index
      %c0_26 = arith.constant 0 : index
      %40 = vector.load %arg6[%c0_25, %c0_26] : memref<8x1xf32, #tpu.memory_space<vmem>>, vector<8x1xf32>
      tpu.vector_store %arg6[%c0_25, %c0_26], %39 {strides = array<i32>} : memref<8x1xf32, #tpu.memory_space<vmem>>, vector<8x1xf32>,
      %cst_27 = arith.constant 0.000000e+00 : f32
      %41 = vector.broadcast %cst_27 : f32 to vector<8x1xf32>
      %c0_28 = arith.constant 0 : index
      %c0_29 = arith.constant 0 : index
      %42 = vector.load %arg7[%c0_28, %c0_29] : memref<8x1xf32, #tpu.memory_space<vmem>>, vector<8x1xf32>
      tpu.vector_store %arg7[%c0_28, %c0_29], %41 {strides = array<i32>} : memref<8x1xf32, #tpu.memory_space<vmem>>, vector<8x1xf32>,
    } else {
    }
    %c0 = arith.constant 0 : index
    %c0_1 = arith.constant 0 : index
    %3 = vector.load %arg2[%c0, %c0_1] : memref<8x32xf32, #tpu.memory_space<vmem>>, vector<8x32xf32>
    %4 = tpu.iota {dimensions = array<i32: 1>} : vector<8x32xi32>
    %c0_2 = arith.constant 0 : index
    %c0_3 = arith.constant 0 : index
    %5 = vector.load %arg3[%c0_2, %c0_3] : memref<8x1xi32, #tpu.memory_space<vmem>>, vector<8x1xi32>
    %c32_i32 = arith.constant 32 : i32
    %6 = arith.muli %arg1, %c32_i32 : i32
    %7 = vector.broadcast %6 : i32 to vector<8x1xi32>
    %8 = arith.subi %5, %7 : vector<8x1xi32>
    %c0_4 = arith.constant 0 : index
    %c0_5 = arith.constant 0 : index
    %9 = vector.load %arg7[%c0_4, %c0_5] : memref<8x1xf32, #tpu.memory_space<vmem>>, vector<8x1xf32>
    %10 = vector.broadcast %8 : vector<8x1xi32> to vector<8x32xi32>
    %11 = arith.cmpi eq, %4, %10 : vector<8x32xi32>
    %cst = arith.constant 0.000000e+00 : f32
    %12 = vector.broadcast %cst : f32 to vector<8x32xf32>
    %13 = arith.select %11, %3, %12 : vector<8x32xi1>, vector<8x32xf32>
    %cst_6 = arith.constant dense<0.000000e+00> : vector<8xf32>
    %14 = vector.multi_reduction <add>, %13, %cst_6 [1] : vector<8x32xf32> to vector<8xf32>
    %15 = vector.shape_cast %14 : vector<8xf32> to vector<8x1xf32>
    %16 = arith.addf %9, %15 : vector<8x1xf32>
    %c0_7 = arith.constant 0 : index
    %c0_8 = arith.constant 0 : index
    %17 = vector.load %arg7[%c0_7, %c0_8] : memref<8x1xf32, #tpu.memory_space<vmem>>, vector<8x1xf32>
    tpu.vector_store %arg7[%c0_7, %c0_8], %16 {strides = array<i32>} : memref<8x1xf32, #tpu.memory_space<vmem>>, vector<8x1xf32>,
    %cst_9 = arith.constant dense<0xFF800000> : vector<8xf32>
    %18 = vector.multi_reduction <maximumf>, %3, %cst_9 [1] : vector<8x32xf32> to vector<8xf32>
    %19 = vector.shape_cast %18 : vector<8xf32> to vector<8x1xf32>
    %c0_10 = arith.constant 0 : index
    %c0_11 = arith.constant 0 : index
    %20 = vector.load %arg5[%c0_10, %c0_11] : memref<8x1xf32, #tpu.memory_space<vmem>>, vector<8x1xf32>
    %21 = arith.maximumf %20, %19 : vector<8x1xf32>
    %c0_12 = arith.constant 0 : index
    %c0_13 = arith.constant 0 : index
    %22 = vector.load %arg6[%c0_12, %c0_13] : memref<8x1xf32, #tpu.memory_space<vmem>>, vector<8x1xf32>
    %23 = arith.subf %20, %21 : vector<8x1xf32>
    %24 = math.exp %23 : vector<8x1xf32>
    %25 = arith.mulf %22, %24 : vector<8x1xf32>
    %26 = vector.broadcast %21 : vector<8x1xf32> to vector<8x32xf32>
    %27 = arith.subf %3, %26 : vector<8x32xf32>
    %28 = math.exp %27 : vector<8x32xf32>
    %cst_14 = arith.constant dense<0.000000e+00> : vector<8xf32>
    %29 = vector.multi_reduction <add>, %28, %cst_14 [1] : vector<8x32xf32> to vector<8xf32>
    %30 = vector.shape_cast %29 : vector<8xf32> to vector<8x1xf32>
    %31 = arith.addf %25, %30 : vector<8x1xf32>
    %c0_15 = arith.constant 0 : index
    %c0_16 = arith.constant 0 : index
    %32 = vector.load %arg6[%c0_15, %c0_16] : memref<8x1xf32, #tpu.memory_space<vmem>>, vector<8x1xf32>
    tpu.vector_store %arg6[%c0_15, %c0_16], %31 {strides = array<i32>} : memref<8x1xf32, #tpu.memory_space<vmem>>, vector<8x1xf32>,
    %c0_17 = arith.constant 0 : index
    %c0_18 = arith.constant 0 : index
    %33 = vector.load %arg5[%c0_17, %c0_18] : memref<8x1xf32, #tpu.memory_space<vmem>>, vector<8x1xf32>
    tpu.vector_store %arg5[%c0_17, %c0_18], %21 {strides = array<i32>} : memref<8x1xf32, #tpu.memory_space<vmem>>, vector<8x1xf32>,
    %c0_i32_19 = arith.constant 0 : i32
    %34 = arith.cmpi eq, %arg1, %c0_i32_19 : i32
    %35 = arith.extui %34 : i1 to i32
    %c0_i32_20 = arith.constant 0 : i32
    %36 = arith.cmpi ne, %35, %c0_i32_20 : i32
    scf.if %36 {
      %c0_21 = arith.constant 0 : index
      %c0_22 = arith.constant 0 : index
      %37 = vector.load %arg5[%c0_21, %c0_22] : memref<8x1xf32, #tpu.memory_space<vmem>>, vector<8x1xf32>
      %c0_23 = arith.constant 0 : index
      %c0_24 = arith.constant 0 : index
      %38 = vector.load %arg6[%c0_23, %c0_24] : memref<8x1xf32, #tpu.memory_space<vmem>>, vector<8x1xf32>
      %39 = math.log %38 : vector<8x1xf32>
      %40 = arith.addf %37, %39 : vector<8x1xf32>
      %c0_25 = arith.constant 0 : index
      %c0_26 = arith.constant 0 : index
      %41 = vector.load %arg7[%c0_25, %c0_26] : memref<8x1xf32, #tpu.memory_space<vmem>>, vector<8x1xf32>
      %42 = arith.subf %40, %41 : vector<8x1xf32>
      %c-1_i32 = arith.constant -1 : i32
      %43 = vector.broadcast %c-1_i32 : i32 to vector<8x1xi32>
      %44 = arith.cmpi ne, %5, %43 : vector<8x1xi32>
      %cst_27 = arith.constant 0.000000e+00 : f32
      %45 = vector.broadcast %cst_27 : f32 to vector<8x1xf32>
      %46 = arith.select %44, %42, %45 : vector<8x1xi1>, vector<8x1xf32>
      %47 = vector.shape_cast %46 : vector<8x1xf32> to vector<1x8x1xf32>
      %cst_28 = arith.constant dense<0.000000e+00> : vector<1xf32>
      %48 = vector.multi_reduction <add>, %47, %cst_28 [1, 2] : vector<1x8x1xf32> to vector<1xf32>
      %49 = vector.shape_cast %48 : vector<1xf32> to vector<1x1x1xf32>
      %50 = vector.extract %49[0, 0, 0] : f32 from vector<1x1x1xf32>
      %51 = arith.extui %44 : vector<8x1xi1> to vector<8x1xi32>
      %52 = arith.sitofp %51 : vector<8x1xi32> to vector<8x1xf32>
      %53 = vector.shape_cast %52 : vector<8x1xf32> to vector<1x8x1xf32>
      %cst_29 = arith.constant dense<0.000000e+00> : vector<1xf32>
      %54 = vector.multi_reduction <add>, %53, %cst_29 [1, 2] : vector<1x8x1xf32> to vector<1xf32>
      %55 = vector.shape_cast %54 : vector<1xf32> to vector<1x1x1xf32>
      %56 = vector.extract %55[0, 0, 0] : f32 from vector<1x1x1xf32>
      %57 = tpu.iota {dimensions = array<i32: 2>} : vector<1x1x128xi32>
      %c0_i32_30 = arith.constant 0 : i32
      %58 = vector.broadcast %c0_i32_30 : i32 to vector<1x1x128xi32>
      %59 = arith.cmpi eq, %57, %58 : vector<1x1x128xi32>
      %cst_31 = arith.constant 0.000000e+00 : f32
      %60 = vector.broadcast %50 : f32 to vector<1x1x128xf32>
      %61 = vector.broadcast %cst_31 : f32 to vector<1x1x128xf32>
      %62 = arith.select %59, %60, %61 : vector<1x1x128xi1>, vector<1x1x128xf32>
      %c1_i32 = arith.constant 1 : i32
      %63 = vector.broadcast %c1_i32 : i32 to vector<1x1x128xi32>
      %64 = arith.cmpi eq, %57, %63 : vector<1x1x128xi32>
      %cst_32 = arith.constant 0.000000e+00 : f32
      %65 = vector.broadcast %56 : f32 to vector<1x1x128xf32>
      %66 = vector.broadcast %cst_32 : f32 to vector<1x1x128xf32>
      %67 = arith.select %64, %65, %66 : vector<1x1x128xi1>, vector<1x1x128xf32>
      %68 = arith.addf %62, %67 : vector<1x1x128xf32>
      %c0_33 = arith.constant 0 : index
      %c0_34 = arith.constant 0 : index
      %c0_35 = arith.constant 0 : index
      %69 = vector.load %arg4[%c0_33, %c0_34, %c0_35] : memref<1x1x128xf32, #tpu.memory_space<vmem>>, vector<1x1x128xf32>
      tpu.vector_store %arg4[%c0_33, %c0_34, %c0_35], %68 {strides = array<i32>} : memref<1x1x128xf32, #tpu.memory_space<vmem>>, vector<1x1x128xf32>,
    } else {
    }
    return
  }
  func.func @transform_0(%arg0: i32, %arg1: i32) -> (i32, i32) {
    %c0_i32 = arith.constant 0 : i32
    return %arg0, %arg1 : i32, i32
  }
  func.func @transform_1(%arg0: i32, %arg1: i32) -> (i32, i32) {
    %c0_i32 = arith.constant 0 : i32
    %c0_i32_0 = arith.constant 0 : i32
    return %arg0, %c0_i32 : i32, i32
  }
  func.func @transform_2(%arg0: i32, %arg1: i32) -> (i32, i32, i32) {
    %c0_i32 = arith.constant 0 : i32
    %c0_i32_0 = arith.constant 0 : i32
    %c0_i32_1 = arith.constant 0 : i32
    return %arg0, %c0_i32, %c0_i32_0 : i32, i32, i32
  }
}

</mosaic_0001>

<bundles_post_ra>
// kernel: tpu_custom_call.1
= control target key start
LH: loop header
LB: loop body
LE: loop exit
PB: predicated region body
PF: predicated region fallthrough
CT: control target
= control target key end

     0   :  { %7 = vsyncpa [#allocation6], 0  ;;  %s676_s0 = inlined_call_operand.vmem [shape: f32[16,32], index: 0, kind: input, shape index: {}]   ;;  %s677_s1 = inlined_call_operand.vmem [shape: s32[16,1], index: 1, kind: input, shape index: {}]   ;;  %s678_s2 = inlined_call_operand.hbm [shape: f32[2,1,128], index: 2, kind: output, shape index: {}]  }
   0x1   :  { %9 = vsyncpa [#allocation6 + $0x1], 0  ;;  %s543_s9 = smov 0   ;;  %s545_s10 = smov 0  }
   0x2   :  { %s547_s11 = smov 0   ;;  %s549_s12 = smov 0  }
   0x3   :  { %s551_s13 = smov 0   ;;  %s553_s14 = smov 0  }
   0x4 LB: > { %s363_s15 = sadd.s32 4294967295, %s522_s14   ;;  %s364_s16 = sadd.s32 4294967294, %s522_s14   ;;  %s522_s14 = sphi %s553_s14, %s15_s14   ;;  %s518_s13 = sphi %s551_s13, %s685_s13   ;;  %s514_s12 = sphi %s549_s12, %s684_s12   ;;  %s510_s11 = sphi %s547_s11, %s683_s11   ;;  %s506_s10 = sphi %s545_s10, %s682_s10   ;;  %s502_s9 = sphi %s543_s9, %s681_s9  }
   0x5   : > { %s27_s17 = sadd.s32 1, %s518_s13  ;;  %s88_s18 = sadd.s32 1, %s510_s11 }
   0x6   : > { %p29_p0 = scmp.ge.s32.totalorder %s27_s17, 2  ;;  %p98_p1 = scmp.ne.s32.totalorder %s510_s11, %s506_s10 }
   0x7   : > { %p99_p2 = scmp.eq.s32.totalorder %s363_s15, 1  ;;  %p104_p3 = scmp.ne.s32.totalorder %s506_s10, %s502_s9 }
   0x8   : > { %s687_s17 = smov (%p29_p0, %s27_s17), 0  ;;  %p105_p5 = scmp.eq.s32.totalorder %s364_s16, 1 }
   0x9   : > { %p583_p4 = por %p99_p2, %p98_p1  ;;  %s85_s20 = ssub.s32 %s518_s13, %s687_s17 }
   0xa   : > { %p367_p6 = scmp.ge.s32.totalorder %s522_s14, 1  ;;  %p86_p7 = scmp.eq.s32.totalorder %s85_s20, 0 }
   0xb   : > { %p590_p8 = por %p105_p5, %p104_p3  ;;  %p140_p9 = scmp.lt.s32.totalorder %s522_s14, 3 }
   0xc   : > { %s596_s22 = scalar_select %p86_p7, %s510_s11, %s88_s18  }
   0xd   : > { %p141_p10 = pnand %p367_p6, %p140_p9 }
   0xe   : > { %p167_p11 = scmp.lt.s32.totalorder (!%p141_p10), %s514_s12, 1  ;;  %vm182_vm0 = vcmask (!%p141_p10), 7168   ;;  %v524_v0 = vmov (!%p141_p10), -1e+30   ;;  %vm199_vm1 = vcmask (!%p141_p10), 261120   ;;  %v525_v3 = vmov (!%p141_p10), 0  }
   0xf   : > { %144 = sbr.rel (%p141_p10) target bundleno = 710 (0x2c6), region = 28  ;;  %183 = vst.msk [vmem:[#allocation2] sm:$0xff] (!%p141_p10), %vm182_vm0, %v524_v0  ;;  %436 = vset.pattern.permute.xlu0 (!%p141_p10), %v525_v3  ;;  %437 = vset.pattern.permute.xlu1 (!%p141_p10), %v525_v3  ;;  %v526_v5 = vmov (!%p141_p10), 0.0   ;;  %v187_v13 = vlaneseq (!%p141_p10)  ;;  %s165_s3 = sand.u32 (!%p141_p10), 1, %s506_s10  }
  0x10   : > { %184 = vst.msk [vmem:[#allocation3] sm:$0xff] (!%p141_p10), %vm182_vm0, %v526_v5  ;;  %185 = vst.msk [vmem:[#allocation4] sm:$0xff] (!%p141_p10), %vm182_vm0, %v526_v5  ;;  %s371_s5 = sshll.u32 (!%p141_p10), %s514_s12, 4  ;;  %s166_s7 = scalar_lea.vmem (!%p141_p10), [#allocation5], %s165_s3 }
  0x11   : > { %v611_v14 = vand.u32 (!%p141_p10), 127, %v187_v13  ;;  %s285_s8 = sshll.u32 (!%p141_p10), %s166_s7, 4  ;;  %s629_s18 = scalar_lea.hbm (!%p141_p10), %s678_s2, %s371_s5  ;;  %s631_s8 = int_to_ptr.vmem [resolvable:$true] %s285_s8 }
  0x12   : > { %s444_s20 = scalar_lea.vmem (!%p141_p10), %s631_s8, 16 }
  0x13   : > { %vm264_vm4 = vcmp.eq.s32.totalorder (!%p141_p10), %v611_v14, 0  ;;  %vm267_vm5 = vcmp.eq.s32.totalorder (!%p141_p10), %v611_v14, 1  ;;  %p445_p12 = scmp.ne.s32.totalorder (!%p141_p10), %s631_s8, %s444_s20 }
  0x15   : > { %p446_p13 = pnand (!%p141_p10), %p445_p12, %p583_p4 }
  0x16   : > { %s168_s23 = scalar_select %p167_p11, %s514_s12, 1  ;;  %v209_v6 = vld [vmem:[#allocation2] sm:$0xff] }
  0x17   : > { %v211_v24 = vld [vmem:[#allocation3] sm:$0xff]  ;;  %v193_v28 = vld [vmem:[#allocation4] sm:$0xff]  ;;  %s273_s12 = scalar_lea.sflag [#allocation6], %s165_s3  ;;  %p447_p0 = pneg %p446_p13 }
  0x18   : > { %s368_s24 = sshll.u32 %s168_s23, 3  ;;  %s527_s23 = smov [#allocation5]  }
  0x19   : > { %s173_s27 = scalar_lea.vmem %s676_s0, %s368_s24  ;;  %s177_s30 = scalar_lea.vmem %s677_s1, %s368_s24 }
  0x1a   : > { %v186_v1 = vld [vmem:[%s173_s27] sm:$0xff]  ;;  %s448_s24 = sshll.u32 %s527_s23, 4  ;;  %s449_s24 = int_to_ptr.vmem [resolvable:$false] %s448_s24 }
  0x1b   : > { %v206_v2 = vsel %vm199_vm1, %v186_v1, -inf  ;;  %v189_v4 = vld [vmem:[%s177_s30] sm:$0xff]  ;;  %s450_s25 = scalar_lea.vmem %s449_s24, 32  ;;  %p451_p1 = scmp.lt.s32.totalorder %s631_s8, %s449_s24 }
  0x1c   : > { %207 = vmax.xlane.f32.xlu0 %v206_v2  ;;  %195 = vperm.xlu1 %437, %v189_v4   ;;  %vm240_vm3 = vcmp.ne.s32.totalorder %v189_v4, 4294967295  ;;  %p452_p2 = scmp.lt.s32.totalorder %s450_s25, %s444_s20 }
  0x1d   : > { %v370_v20 = vsel %vm240_vm3, 1.0, %v526_v5 }
  0x1e   : > { %v254_v21 = vsel %vm182_vm0, %v370_v20, 0.0  ;;  %p453_p3 = por %p452_p2, %p451_p1 }
  0x20   : > { %p454_p5 = pnand %p453_p3, %p447_p0 }
  0x9b   : > { %v196_v15 = vpop.permute.xlu1 %195 }
  0x9c   : > { %vm197_vm2 = vcmp.eq.s32.totalorder %v611_v14, %v196_v15 }
  0x9d   : > { %v198_v17 = vsel %vm197_vm2, %v186_v1, 0.0 }
  0x9e   : > { %v200_v19 = vsel %vm199_vm1, %v198_v17, 0.0 }
  0xa9   : > { %v208_v7 = vpop.xlane.xlu0 %207 }
  0xaa   : > { %v210_v8 = vmax.f32 %v209_v6, %v208_v7 }
  0xac   : > { %v212_v9 = vsub.f32 %v209_v6, %v210_v8  ;;  %229 = vst.msk [vmem:[#allocation2] sm:$0xff] %vm182_vm0, %v210_v8  ;;  %218 = vperm.xlu0 %436, %v210_v8  }
  0xae   : > { %v213_v22 = vmul.f32 1.442695, %v212_v9 }
  0xb3   : > { %v233_v34 = vld [vmem:[#allocation2] sm:$0xff] }
  0xcb   : > { %255 = vadd.xlane.f32.xlu0 %v254_v21 }
 0x12b   : > { %v219_v10 = vpop.permute.xlu0 %218 }
 0x12c   : > { %v221_v11 = vsub.f32 %v186_v1, %v219_v10 }
 0x12e   : > { %v222_v12 = vmul.f32 1.442695, %v221_v11 }
 0x130   : > { %438 = vpow2.f32 %v222_v12 }
 0x131   : > { %440 = vpow2.f32 %v213_v22 }
 0x13a   : > { %v439_v16 = vpop.eup %438 }
 0x13b   : > { %v224_v18 = vsel %vm199_vm1, %v439_v16, 0.0  ;;  %v441_v23 = vpop.eup %440 }
 0x13c   : > { %225 = vadd.xlane.f32.xlu1 %v224_v18  ;;  %v215_v25 = vmul.f32 %v441_v23, %v211_v24 }
 0x140   : > { %201 = vadd.xlane.f32.xlu1 %v200_v19 }
 0x158   : > { %v256_v40 = vpop.xlane.xlu0 %255 }
 0x159   : > { %v257_v41 = vrot.slane %v256_v40, 4 }
 0x15b   : > { %v258_v42 = vadd.f32 %v257_v41, %v256_v40 }
 0x15d   : > { %v259_v43 = vrot.slane %v258_v42, 2 }
 0x15f   : > { %v260_v47 = vadd.f32 %v259_v43, %v258_v42 }
 0x161   : > { %v261_v50 = vrot.slane %v260_v47, 1 }
 0x163   : > { %v262_v53 = vadd.f32 %v261_v50, %v260_v47 }
 0x1c9   : > { %v226_v26 = vpop.xlane.xlu1 %225 }
 0x1ca   : > { %v227_v27 = vadd.f32 %v226_v26, %v215_v25 }
 0x1cc   : > { %228 = vst.msk [vmem:[#allocation3] sm:$0xff] %vm182_vm0, %v227_v27 }
 0x1cd   : > { %v202_v29 = vpop.xlane.xlu1 %201 }
 0x1ce   : > { %v203_v30 = vadd.f32 %v202_v29, %v193_v28 }
 0x1d0   : > { %205 = vst.msk [vmem:[#allocation4] sm:$0xff] %vm182_vm0, %v203_v30 }
 0x1d3   : > { %v234_v31 = vld [vmem:[#allocation3] sm:$0xff] }
 0x1d4   : > { %442 = vlog2.f32 %v234_v31 }
 0x1d7   : > { %v238_v35 = vld [vmem:[#allocation4] sm:$0xff] }
 0x1de   : > { %v443_v32 = vpop.eup %442 }
 0x1df   : > { %v236_v33 = vmul.f32 0.6931472, %v443_v32 }
 0x1e1   : > { %v237_v36 = vadd.f32 %v236_v33, %v233_v34 }
 0x1e3   : > { %v239_v37 = vsub.f32 %v237_v36, %v238_v35 }
 0x1e5   : > { %v241_v38 = vsel %vm240_vm3, %v239_v37, 0.0 }
 0x1e6   : > { %v242_v39 = vsel %vm182_vm0, %v241_v38, 0.0 }
 0x1e7   : > { %243 = vadd.xlane.f32.xlu1 %v242_v39 }
 0x274   : > { %v244_v44 = vpop.xlane.xlu1 %243 }
 0x275   : > { %v245_v45 = vrot.slane %v244_v44, 4 }
 0x277   : > { %v246_v46 = vadd.f32 %v245_v45, %v244_v44 }
 0x279   : > { %v247_v48 = vrot.slane %v246_v46, 2 }
 0x27b   : > { %v248_v49 = vadd.f32 %v247_v48, %v246_v46 }
 0x27d   : > { %v249_v51 = vrot.slane %v248_v49, 1 }
 0x27f   : > { %v250_v52 = vadd.f32 %v249_v51, %v248_v49 }
 0x281   : > { %374 = vpush %v250_v52 }
 0x282   : > { %376 = vpush %v262_v53 }
 0x2b2   : > { %s375_s4 = spop %374 }
 0x2b3   : > { %v265_v54 = vstv %s375_s4  ;;  %s377_s6 = spop %376 }
 0x2b4   : > { %v266_v55 = vsel %vm264_vm4, %v265_v54, 0.0  ;;  %v268_v56 = vstv %s377_s6 }
 0x2b5   : > { %v269_v57 = vsel %vm267_vm5, %v268_v56, 0.0 }
 0x2b6   : > { %v270_v58 = vadd.f32 %v269_v57, %v266_v55 }
 0x2b8   : > { %271 = vst [vmem:[%s166_s7] sm:$0x1] %v270_v58 }
 0x2b9   : > { %457 = shalt.err (!%p454_p5)
}
 0x2ba   : > { %s458_s26 = scalar_lea.hbm %s629_s18, 16  ;;  %s462_s29 = scalar_lea.hbm %s678_s2, 32 }
 0x2bb   : > { %p459_p6 = scmp.ne.s32.totalorder %s629_s18, %s458_s26  ;;  %p463_p10 = scmp.lt.u32.totalorder %s629_s18, %s678_s2 }
 0x2bc   : > { %p464_p11 = scmp.lt.u32.totalorder %s462_s29, %s458_s26  ;;  %p466_p13 = scmp.lt.u32.totalorder %s458_s26, %s629_s18 }
 0x2bd   : > { %p460_p7 = pnand %p459_p6, %p583_p4 }
 0x2be   : > { %p465_p12 = por %p464_p11, %p463_p10 }
 0x2bf   : > { %p461_p9 = pneg %p460_p7 }
 0x2c0   : > { %p467_p0 = por %p466_p13, %p465_p12 }
 0x2c2   : > { %p468_p1 = pnand %p467_p0, %p461_p9 }
 0x2c4   : > { %471 = shalt.err (!%p468_p1)
}
 0x2c5   : > { %378 = dma.vmem_to_hbm [thread:$0]  (%p583_p4), %s631_s8, 16, %s629_s18, %s273_s12  }
 0x2c6 PF: > { %p384_p2 = scmp.ge.s32.totalorder %s522_s14, 2  ;;  %s297_s4 = sand.u32 1, %s502_s9  }
 0x2c7   : > { %s298_s5 = scalar_lea.sflag [#allocation6], %s297_s4 }
 0x2c8   : > { %p381_p3 = pnand %p384_p2, %p590_p8 }
 0x2ca   : > { %497 = dma.done.wait (!%p381_p3), %s298_s5, 16  }
 0x2cb   : > { %499 = vsyncadd (!%p381_p3), %s298_s5, 4294967280  ;;  %s15_s14 = sadd.s32 1, %s522_s14   ;;  %s681_s9 = smov %s506_s10 }
 0x2cc   : > { %p12_p5 = scmp.ge.s32.totalorder %s15_s14, 4   ;;  %s682_s10 = smov %s510_s11 }
 0x2cd   : > { %s683_s11 = smov %s596_s22  ;;  %s684_s12 = smov %s518_s13 }
 0x2ce   : > { %s685_s13 = smov %s687_s17  ;;  %14 = sbr.rel (!%p12_p5) target bundleno = 4 (0x4), region = 74 }
 0x2d5   :  { %302 = vsyncpa [#allocation6], 1 }
 0x2d6   :  { %304 = vsyncpa [#allocation6 + $0x1], 1 }

</bundles_post_ra>
